<compile_context>
chip_gen: v7x
topology: tpu7x:2x2x1
jax: 0.10.0
libtpu: 0.0.40
codegen_flags: <defaults>
</compile_context>

<pallas_src>
import jax
import jax.numpy as jnp
from jax import lax
from jax.experimental import pallas as pl
from jax.experimental.pallas import tpu as pltpu

_B_TILE = 8  # batch rows per grid step (sublane multiple)


def birnn_gru_kernel(gi_ref, mask_ref, whh_ref, bhh_ref, wfc_ref, bfc_ref, out_ref):
    T, B, G = gi_ref.shape            # G = 6H, cols = [r_f r_b | z_f z_b | n_f n_b]
    H2 = G // 3                       # 2H

    # Hoist weight/bias loads out of the recurrence.
    whh = whh_ref[...]                # (2H, 6H) bf16, block-diagonal per gate
    bhh = bhh_ref[...]                # (1, 6H)  f32
    wfc = wfc_ref[...]                # (2H, O)  bf16, rows ordered for [h_f | h_b]
    bfc = bfc_ref[...]                # (1, O)   f32

    def step(i, h):
        gi_t = gi_ref[i]                                          # (B, 6H) f32
        gh = jnp.dot(h.astype(jnp.bfloat16), whh,
                     preferred_element_type=jnp.float32) + bhh    # (B, 6H) f32
        r = jax.nn.sigmoid(gi_t[:, 0:H2] + gh[:, 0:H2])
        z = jax.nn.sigmoid(gi_t[:, H2:2 * H2] + gh[:, H2:2 * H2])
        n = jnp.tanh(gi_t[:, 2 * H2:3 * H2] + r * gh[:, 2 * H2:3 * H2])
        h_new = (1.0 - z) * n + z * h
        # jnp.where (not arithmetic masking) so padded timesteps can never leak
        # into the hidden state.
        return jnp.where(mask_ref[i] != 0.0, h_new, h)

    h0 = jnp.zeros((B, H2), jnp.float32)
    h = lax.fori_loop(0, T, step, h0, unroll=True)

    logits = jnp.dot(h.astype(jnp.bfloat16), wfc,
                     preferred_element_type=jnp.float32) + bfc
    out_ref[...] = jax.nn.sigmoid(logits)


def init_params(key, vocab_size, hidden_size, output_size):
    """Parameters in PyTorch layout (same shapes as the nn.Module's tensors)."""
    H, O = hidden_size, output_size
    ks = jax.random.split(key, 11)
    s = 0.1
    return {
        "embedding": jax.random.normal(ks[0], (vocab_size, H), jnp.float32) * s,
        "w_ih_f": jax.random.normal(ks[1], (3 * H, H), jnp.float32) * s,
        "w_hh_f": jax.random.normal(ks[2], (3 * H, H), jnp.float32) * s,
        "b_ih_f": jax.random.normal(ks[3], (3 * H,), jnp.float32) * s,
        "b_hh_f": jax.random.normal(ks[4], (3 * H,), jnp.float32) * s,
        "w_ih_b": jax.random.normal(ks[5], (3 * H, H), jnp.float32) * s,
        "w_hh_b": jax.random.normal(ks[6], (3 * H, H), jnp.float32) * s,
        "b_ih_b": jax.random.normal(ks[7], (3 * H,), jnp.float32) * s,
        "b_hh_b": jax.random.normal(ks[8], (3 * H,), jnp.float32) * s,
        "fc_w": jax.random.normal(ks[9], (O, 2 * H), jnp.float32) * s,
        "fc_b": jax.random.normal(ks[10], (O,), jnp.float32) * s,
    }


def _fuse_gru_weights(params):
    """Build the fused, gate-major kernel operands from PyTorch-layout params."""
    H = params["w_ih_f"].shape[1]

    def gates(w):  # (3H, H) torch -> per-gate (H_in, H_out)
        return w.reshape(3, H, H).transpose(0, 2, 1)

    wi_f, wi_b = gates(params["w_ih_f"]), gates(params["w_ih_b"])
    wh_f, wh_b = gates(params["w_hh_f"]), gates(params["w_hh_b"])
    bi_f, bi_b = params["b_ih_f"].reshape(3, H), params["b_ih_b"].reshape(3, H)
    bh_f, bh_b = params["b_hh_f"].reshape(3, H), params["b_hh_b"].reshape(3, H)

    # Input projection weight (H, 6H), cols = [r_f r_b | z_f z_b | n_f n_b].
    w_gi = jnp.concatenate(
        [jnp.concatenate([wi_f[g], wi_b[g]], axis=1) for g in range(3)], axis=1)
    b_gi = jnp.concatenate(
        [jnp.concatenate([bi_f[g], bi_b[g]]) for g in range(3)])            # (6H,)

    # Hidden projection: block-diagonal per gate, (2H, 6H).
    zero = jnp.zeros((H, H), jnp.float32)
    blocks = []
    for g in range(3):
        top = jnp.concatenate([wh_f[g], zero], axis=1)    # rows acting on h_f
        bot = jnp.concatenate([zero, wh_b[g]], axis=1)    # rows acting on h_b
        blocks.append(jnp.concatenate([top, bot], axis=0))
    w_gh = jnp.concatenate(blocks, axis=1)                                   # (2H, 6H)
    b_gh = jnp.concatenate(
        [jnp.concatenate([bh_f[g], bh_b[g]]) for g in range(3)]).reshape(1, 6 * H)

    # torch fc acts on [h_b, h_f]; kernel h is [h_f | h_b] -> swap row blocks.
    w_fc = jnp.concatenate([params["fc_w"][:, H:].T, params["fc_w"][:, :H].T], axis=0)
    b_fc = params["fc_b"].reshape(1, -1)
    return w_gi, b_gi, w_gh, b_gh, w_fc, b_fc


@jax.jit
def rnn_classifier_forward(tokens, seq_lengths, params):
    B, T = tokens.shape
    H = params["w_ih_f"].shape[1]
    O = params["fc_w"].shape[0]
    G = 6 * H

    w_gi, b_gi, w_gh, b_gh, w_fc, b_fc = _fuse_gru_weights(params)

    # Pad batch to a multiple of 8 sublanes; padded rows get length 0 (never update).
    b_tile = _B_TILE
    B_pad = ((B + b_tile - 1) // b_tile) * b_tile
    pad = B_pad - B
    tokens_p = jnp.pad(tokens, ((0, pad), (0, 0)))
    lens_p = jnp.pad(seq_lengths.astype(jnp.int32), (0, pad))

    # Hoisted input projection: one large matmul in XLA, produced time-major so no
    # separate transpose of the embedded activations is needed.
    emb = params["embedding"][tokens_p]                            # (B_pad, T, H)
    gi = jnp.einsum("bth,hg->btg", emb, w_gi) + b_gi               # (B_pad, T, 6H)
    # Pre-reverse the backward-direction half along time so one fused loop serves
    # fwd time i and bwd time T-1-i at step i.
    gi = gi.reshape(B_pad, T, 3, 2, H)
    gi = gi.at[:, :, :, 1, :].set(jnp.flip(gi[:, :, :, 1, :], axis=1))
    gi = gi.reshape(B_pad, T, G)
    gi = jnp.transpose(gi, (1, 0, 2))                              # (T, B_pad, 6H)

    # pack_padded_sequence update mask, precomputed outside the hot loop.
    t_idx = jnp.arange(T)[:, None, None]
    lens_c = lens_p[None, :, None]
    fwd_upd = jnp.broadcast_to(t_idx < lens_c, (T, B_pad, H))
    bwd_upd = jnp.broadcast_to((T - 1 - t_idx) < lens_c, (T, B_pad, H))
    mask = jnp.concatenate([fwd_upd, bwd_upd], axis=-1).astype(jnp.float32)

    # bf16 MXU operands, f32 accumulation inside the kernel.
    w_gh_b = w_gh.astype(jnp.bfloat16)
    w_fc_b = w_fc.astype(jnp.bfloat16)

    grid = (B_pad // b_tile,)

    # TODO(synk): for production shapes (large T/H/B) stream gi over a time-blocked
    # grid (or pltpu.emit_pipeline) instead of keeping the whole (T,B,6H) slab in
    # VMEM — mandatory on v7x (64 MiB VMEM) and v5e (16 MiB default scoped limit).
    out = pl.pallas_call(
        birnn_gru_kernel,
        out_shape=jax.ShapeDtypeStruct((B_pad, O), jnp.float32),
        grid_spec=pltpu.PrefetchScalarGridSpec(
            num_scalar_prefetch=0,
            grid=grid,
            in_specs=[
                pl.BlockSpec((T, b_tile, G), lambda b: (0, b, 0)),        # gi
                pl.BlockSpec((T, b_tile, 2 * H), lambda b: (0, b, 0)),    # mask
                pl.BlockSpec((2 * H, G), lambda b: (0, 0)),               # W_hh
                pl.BlockSpec((1, G), lambda b: (0, 0)),                   # b_hh
                pl.BlockSpec((2 * H, O), lambda b: (0, 0)),               # W_fc
                pl.BlockSpec((1, O), lambda b: (0, 0)),                   # b_fc
            ],
            out_specs=pl.BlockSpec((b_tile, O), lambda b: (b, 0)),
        ),
        compiler_params=pltpu.CompilerParams(
            dimension_semantics=("parallel",)),
    )(gi, mask, w_gh_b, b_gh, w_fc_b, b_fc)
    return out[:B]


def reference_forward(tokens, seq_lengths, params):
    """Pure-JAX f32 reference matching the PyTorch RNNClassifier.forward."""
    B, T = tokens.shape
    H = params["w_ih_f"].shape[1]
    emb = params["embedding"][tokens]                              # (B, T, H)

    def run_dir(w_ih, w_hh, b_ih, b_hh, reverse):
        h = jnp.zeros((B, H), jnp.float32)
        order = range(T - 1, -1, -1) if reverse else range(T)
        for t in order:
            x_t = emb[:, t, :]
            gi = x_t @ w_ih.T + b_ih
            gh = h @ w_hh.T + b_hh
            r = jax.nn.sigmoid(gi[:, :H] + gh[:, :H])
            z = jax.nn.sigmoid(gi[:, H:2 * H] + gh[:, H:2 * H])
            n = jnp.tanh(gi[:, 2 * H:] + r * gh[:, 2 * H:])
            h_new = (1.0 - z) * n + z * h
            h = jnp.where((t < seq_lengths)[:, None], h_new, h)
        return h

    h_f = run_dir(params["w_ih_f"], params["w_hh_f"], params["b_ih_f"], params["b_hh_f"], False)
    h_b = run_dir(params["w_ih_b"], params["w_hh_b"], params["b_ih_b"], params["b_hh_b"], True)
    h_cat = jnp.concatenate([h_b, h_f], axis=1)   # torch: cat([hidden[-1], hidden[-2]])
    return jax.nn.sigmoid(h_cat @ params["fc_w"].T + params["fc_b"])


if __name__ == "__main__":
    vocab_size, hidden_size, output_size = 30, 32, 5
    B, T = 4, 8

    key = jax.random.PRNGKey(0)
    k_params, k_tok = jax.random.split(key)
    params = init_params(k_params, vocab_size, hidden_size, output_size)

    # Sorted-descending lengths (pack_padded_sequence with enforce_sorted=True).
    seq_lengths = jnp.array([8, 6, 5, 3], dtype=jnp.int32)
    tokens = jax.random.randint(k_tok, (B, T), 0, vocab_size, dtype=jnp.int32)
    pad_mask = jnp.arange(T)[None, :] < seq_lengths[:, None]
    tokens = jnp.where(pad_mask, tokens, 0)

    out = rnn_classifier_forward(tokens, seq_lengths, params)
    out = jax.block_until_ready(out)
    assert out.shape == (B, output_size)

    ref = reference_forward(tokens, seq_lengths, params)
    max_err = float(jnp.max(jnp.abs(out - ref)))
    assert max_err < 5e-2, f"kernel/reference mismatch: max abs err = {max_err}"

    print("KERNEL_OK")
</pallas_src>

<mosaic_0001>
module attributes {stable_mosaic.version = 11 : i64} {
  func.func @birnn_gru_kernel(%arg0: i32, %arg1: memref<8x8x192xf32, #tpu.memory_space<vmem>>, %arg2: memref<8x8x64xf32, #tpu.memory_space<vmem>>, %arg3: memref<64x192xbf16, #tpu.memory_space<vmem>>, %arg4: memref<1x192xf32, #tpu.memory_space<vmem>>, %arg5: memref<64x5xbf16, #tpu.memory_space<vmem>>, %arg6: memref<1x5xf32, #tpu.memory_space<vmem>>, %arg7: memref<8x5xf32, #tpu.memory_space<vmem>>) attributes {dimension_semantics = [#tpu.dimension_semantics<parallel>], iteration_bounds = array<i64: 1>, scalar_prefetch = 0 : i64, scratch_operands = 0 : i64, tpu.core_type = #tpu.core_type<tc>, window_params = [{transform_indices = @transform_0, window_bounds = array<i64: 8, 8, 192>}, {transform_indices = @transform_1, window_bounds = array<i64: 8, 8, 64>}, {pipeline_mode = #tpu.pipeline_mode<synchronous>, transform_indices = @transform_2, window_bounds = array<i64: 64, 192>}, {pipeline_mode = #tpu.pipeline_mode<synchronous>, transform_indices = @transform_3, window_bounds = array<i64: 1, 192>}, {pipeline_mode = #tpu.pipeline_mode<synchronous>, transform_indices = @transform_4, window_bounds = array<i64: 64, 5>}, {pipeline_mode = #tpu.pipeline_mode<synchronous>, transform_indices = @transform_5, window_bounds = array<i64: 1, 5>}, {transform_indices = @transform_6, window_bounds = array<i64: 8, 5>}]} {
    %c0 = arith.constant 0 : index
    %c0_0 = arith.constant 0 : index
    %0 = vector.load %arg3[%c0, %c0_0] : memref<64x192xbf16, #tpu.memory_space<vmem>>, vector<64x192xbf16>
    %c0_1 = arith.constant 0 : index
    %c0_2 = arith.constant 0 : index
    %1 = vector.load %arg4[%c0_1, %c0_2] : memref<1x192xf32, #tpu.memory_space<vmem>>, vector<1x192xf32>
    %c0_3 = arith.constant 0 : index
    %c0_4 = arith.constant 0 : index
    %2 = vector.load %arg5[%c0_3, %c0_4] : memref<64x5xbf16, #tpu.memory_space<vmem>>, vector<64x5xbf16>
    %c0_5 = arith.constant 0 : index
    %c0_6 = arith.constant 0 : index
    %3 = vector.load %arg6[%c0_5, %c0_6] : memref<1x5xf32, #tpu.memory_space<vmem>>, vector<1x5xf32>
    %cst = arith.constant 0.000000e+00 : f32
    %4 = vector.broadcast %cst : f32 to vector<8x64xf32>
    %c0_i32 = arith.constant 0 : i32
    %5 = arith.index_cast %c0_i32 : i32 to index
    %c0_7 = arith.constant 0 : index
    %c0_8 = arith.constant 0 : index
    %6 = vector.load %arg1[%5, %c0_7, %c0_8] : memref<8x8x192xf32, #tpu.memory_space<vmem>>, vector<1x8x192xf32>
    %7 = vector.shape_cast %6 : vector<1x8x192xf32> to vector<8x192xf32>
    %8 = arith.truncf %4 : vector<8x64xf32> to vector<8x64xbf16>
    %cst_9 = arith.constant dense<0.000000e+00> : vector<8x192xf32>
    %9 = tpu.matmul %8, %0, %cst_9 {dimension_numbers = #tpu.dot_dimension_numbers<[1], [0], [0], [1], [0, 0, 1, 1], [], []>} : vector<8x64xbf16>, vector<64x192xbf16>, vector<8x192xf32> -> vector<8x192xf32>
    %10 = vector.broadcast %1 : vector<1x192xf32> to vector<8x192xf32>
    %11 = arith.addf %9, %10 : vector<8x192xf32>
    %12 = vector.extract_strided_slice %7 {offsets = [0, 0], sizes = [8, 64], strides = [1, 1]} : vector<8x192xf32> to vector<8x64xf32>
    %13 = vector.extract_strided_slice %11 {offsets = [0, 0], sizes = [8, 64], strides = [1, 1]} : vector<8x192xf32> to vector<8x64xf32>
    %14 = arith.addf %12, %13 : vector<8x64xf32>
    %15 = arith.negf %14 : vector<8x64xf32>
    %16 = math.exp %15 : vector<8x64xf32>
    %cst_10 = arith.constant 1.000000e+00 : f32
    %17 = vector.broadcast %cst_10 : f32 to vector<8x64xf32>
    %18 = arith.addf %17, %16 : vector<8x64xf32>
    %19 = arith.divf %17, %18 : vector<8x64xf32>
    %20 = vector.extract_strided_slice %7 {offsets = [0, 64], sizes = [8, 64], strides = [1, 1]} : vector<8x192xf32> to vector<8x64xf32>
    %21 = vector.extract_strided_slice %11 {offsets = [0, 64], sizes = [8, 64], strides = [1, 1]} : vector<8x192xf32> to vector<8x64xf32>
    %22 = arith.addf %20, %21 : vector<8x64xf32>
    %23 = arith.negf %22 : vector<8x64xf32>
    %24 = math.exp %23 : vector<8x64xf32>
    %cst_11 = arith.constant 1.000000e+00 : f32
    %25 = vector.broadcast %cst_11 : f32 to vector<8x64xf32>
    %26 = arith.addf %25, %24 : vector<8x64xf32>
    %27 = arith.divf %25, %26 : vector<8x64xf32>
    %28 = vector.extract_strided_slice %7 {offsets = [0, 128], sizes = [8, 64], strides = [1, 1]} : vector<8x192xf32> to vector<8x64xf32>
    %29 = vector.extract_strided_slice %11 {offsets = [0, 128], sizes = [8, 64], strides = [1, 1]} : vector<8x192xf32> to vector<8x64xf32>
    %30 = arith.mulf %19, %29 : vector<8x64xf32>
    %31 = arith.addf %28, %30 : vector<8x64xf32>
    %32 = math.tanh %31 : vector<8x64xf32>
    %cst_12 = arith.constant 1.000000e+00 : f32
    %33 = vector.broadcast %cst_12 : f32 to vector<8x64xf32>
    %34 = arith.subf %33, %27 : vector<8x64xf32>
    %35 = arith.mulf %34, %32 : vector<8x64xf32>
    %36 = arith.mulf %27, %4 : vector<8x64xf32>
    %37 = arith.addf %35, %36 : vector<8x64xf32>
    %38 = arith.index_cast %c0_i32 : i32 to index
    %c0_13 = arith.constant 0 : index
    %c0_14 = arith.constant 0 : index
    %39 = vector.load %arg2[%38, %c0_13, %c0_14] : memref<8x8x64xf32, #tpu.memory_space<vmem>>, vector<1x8x64xf32>
    %40 = vector.shape_cast %39 : vector<1x8x64xf32> to vector<8x64xf32>
    %cst_15 = arith.constant 0.000000e+00 : f32
    %41 = vector.broadcast %cst_15 : f32 to vector<8x64xf32>
    %42 = arith.cmpf one, %40, %41 : vector<8x64xf32>
    %43 = arith.select %42, %37, %4 : vector<8x64xi1>, vector<8x64xf32>
    %c1_i32 = arith.constant 1 : i32
    %44 = arith.index_cast %c1_i32 : i32 to index
    %c0_16 = arith.constant 0 : index
    %c0_17 = arith.constant 0 : index
    %45 = vector.load %arg1[%44, %c0_16, %c0_17] : memref<8x8x192xf32, #tpu.memory_space<vmem>>, vector<1x8x192xf32>
    %46 = vector.shape_cast %45 : vector<1x8x192xf32> to vector<8x192xf32>
    %47 = arith.truncf %43 : vector<8x64xf32> to vector<8x64xbf16>
    %cst_18 = arith.constant dense<0.000000e+00> : vector<8x192xf32>
    %48 = tpu.matmul %47, %0, %cst_18 {dimension_numbers = #tpu.dot_dimension_numbers<[1], [0], [0], [1], [0, 0, 1, 1], [], []>} : vector<8x64xbf16>, vector<64x192xbf16>, vector<8x192xf32> -> vector<8x192xf32>
    %49 = vector.broadcast %1 : vector<1x192xf32> to vector<8x192xf32>
    %50 = arith.addf %48, %49 : vector<8x192xf32>
    %51 = vector.extract_strided_slice %46 {offsets = [0, 0], sizes = [8, 64], strides = [1, 1]} : vector<8x192xf32> to vector<8x64xf32>
    %52 = vector.extract_strided_slice %50 {offsets = [0, 0], sizes = [8, 64], strides = [1, 1]} : vector<8x192xf32> to vector<8x64xf32>
    %53 = arith.addf %51, %52 : vector<8x64xf32>
    %54 = arith.negf %53 : vector<8x64xf32>
    %55 = math.exp %54 : vector<8x64xf32>
    %cst_19 = arith.constant 1.000000e+00 : f32
    %56 = vector.broadcast %cst_19 : f32 to vector<8x64xf32>
    %57 = arith.addf %56, %55 : vector<8x64xf32>
    %58 = arith.divf %56, %57 : vector<8x64xf32>
    %59 = vector.extract_strided_slice %46 {offsets = [0, 64], sizes = [8, 64], strides = [1, 1]} : vector<8x192xf32> to vector<8x64xf32>
    %60 = vector.extract_strided_slice %50 {offsets = [0, 64], sizes = [8, 64], strides = [1, 1]} : vector<8x192xf32> to vector<8x64xf32>
    %61 = arith.addf %59, %60 : vector<8x64xf32>
    %62 = arith.negf %61 : vector<8x64xf32>
    %63 = math.exp %62 : vector<8x64xf32>
    %cst_20 = arith.constant 1.000000e+00 : f32
    %64 = vector.broadcast %cst_20 : f32 to vector<8x64xf32>
    %65 = arith.addf %64, %63 : vector<8x64xf32>
    %66 = arith.divf %64, %65 : vector<8x64xf32>
    %67 = vector.extract_strided_slice %46 {offsets = [0, 128], sizes = [8, 64], strides = [1, 1]} : vector<8x192xf32> to vector<8x64xf32>
    %68 = vector.extract_strided_slice %50 {offsets = [0, 128], sizes = [8, 64], strides = [1, 1]} : vector<8x192xf32> to vector<8x64xf32>
    %69 = arith.mulf %58, %68 : vector<8x64xf32>
    %70 = arith.addf %67, %69 : vector<8x64xf32>
    %71 = math.tanh %70 : vector<8x64xf32>
    %cst_21 = arith.constant 1.000000e+00 : f32
    %72 = vector.broadcast %cst_21 : f32 to vector<8x64xf32>
    %73 = arith.subf %72, %66 : vector<8x64xf32>
    %74 = arith.mulf %73, %71 : vector<8x64xf32>
    %75 = arith.mulf %66, %43 : vector<8x64xf32>
    %76 = arith.addf %74, %75 : vector<8x64xf32>
    %77 = arith.index_cast %c1_i32 : i32 to index
    %c0_22 = arith.constant 0 : index
    %c0_23 = arith.constant 0 : index
    %78 = vector.load %arg2[%77, %c0_22, %c0_23] : memref<8x8x64xf32, #tpu.memory_space<vmem>>, vector<1x8x64xf32>
    %79 = vector.shape_cast %78 : vector<1x8x64xf32> to vector<8x64xf32>
    %cst_24 = arith.constant 0.000000e+00 : f32
    %80 = vector.broadcast %cst_24 : f32 to vector<8x64xf32>
    %81 = arith.cmpf one, %79, %80 : vector<8x64xf32>
    %82 = arith.select %81, %76, %43 : vector<8x64xi1>, vector<8x64xf32>
    %c2_i32 = arith.constant 2 : i32
    %83 = arith.index_cast %c2_i32 : i32 to index
    %c0_25 = arith.constant 0 : index
    %c0_26 = arith.constant 0 : index
    %84 = vector.load %arg1[%83, %c0_25, %c0_26] : memref<8x8x192xf32, #tpu.memory_space<vmem>>, vector<1x8x192xf32>
    %85 = vector.shape_cast %84 : vector<1x8x192xf32> to vector<8x192xf32>
    %86 = arith.truncf %82 : vector<8x64xf32> to vector<8x64xbf16>
    %cst_27 = arith.constant dense<0.000000e+00> : vector<8x192xf32>
    %87 = tpu.matmul %86, %0, %cst_27 {dimension_numbers = #tpu.dot_dimension_numbers<[1], [0], [0], [1], [0, 0, 1, 1], [], []>} : vector<8x64xbf16>, vector<64x192xbf16>, vector<8x192xf32> -> vector<8x192xf32>
    %88 = vector.broadcast %1 : vector<1x192xf32> to vector<8x192xf32>
    %89 = arith.addf %87, %88 : vector<8x192xf32>
    %90 = vector.extract_strided_slice %85 {offsets = [0, 0], sizes = [8, 64], strides = [1, 1]} : vector<8x192xf32> to vector<8x64xf32>
    %91 = vector.extract_strided_slice %89 {offsets = [0, 0], sizes = [8, 64], strides = [1, 1]} : vector<8x192xf32> to vector<8x64xf32>
    %92 = arith.addf %90, %91 : vector<8x64xf32>
    %93 = arith.negf %92 : vector<8x64xf32>
    %94 = math.exp %93 : vector<8x64xf32>
    %cst_28 = arith.constant 1.000000e+00 : f32
    %95 = vector.broadcast %cst_28 : f32 to vector<8x64xf32>
    %96 = arith.addf %95, %94 : vector<8x64xf32>
    %97 = arith.divf %95, %96 : vector<8x64xf32>
    %98 = vector.extract_strided_slice %85 {offsets = [0, 64], sizes = [8, 64], strides = [1, 1]} : vector<8x192xf32> to vector<8x64xf32>
    %99 = vector.extract_strided_slice %89 {offsets = [0, 64], sizes = [8, 64], strides = [1, 1]} : vector<8x192xf32> to vector<8x64xf32>
    %100 = arith.addf %98, %99 : vector<8x64xf32>
    %101 = arith.negf %100 : vector<8x64xf32>
    %102 = math.exp %101 : vector<8x64xf32>
    %cst_29 = arith.constant 1.000000e+00 : f32
    %103 = vector.broadcast %cst_29 : f32 to vector<8x64xf32>
    %104 = arith.addf %103, %102 : vector<8x64xf32>
    %105 = arith.divf %103, %104 : vector<8x64xf32>
    %106 = vector.extract_strided_slice %85 {offsets = [0, 128], sizes = [8, 64], strides = [1, 1]} : vector<8x192xf32> to vector<8x64xf32>
    %107 = vector.extract_strided_slice %89 {offsets = [0, 128], sizes = [8, 64], strides = [1, 1]} : vector<8x192xf32> to vector<8x64xf32>
    %108 = arith.mulf %97, %107 : vector<8x64xf32>
    %109 = arith.addf %106, %108 : vector<8x64xf32>
    %110 = math.tanh %109 : vector<8x64xf32>
    %cst_30 = arith.constant 1.000000e+00 : f32
    %111 = vector.broadcast %cst_30 : f32 to vector<8x64xf32>
    %112 = arith.subf %111, %105 : vector<8x64xf32>
    %113 = arith.mulf %112, %110 : vector<8x64xf32>
    %114 = arith.mulf %105, %82 : vector<8x64xf32>
    %115 = arith.addf %113, %114 : vector<8x64xf32>
    %116 = arith.index_cast %c2_i32 : i32 to index
    %c0_31 = arith.constant 0 : index
    %c0_32 = arith.constant 0 : index
    %117 = vector.load %arg2[%116, %c0_31, %c0_32] : memref<8x8x64xf32, #tpu.memory_space<vmem>>, vector<1x8x64xf32>
    %118 = vector.shape_cast %117 : vector<1x8x64xf32> to vector<8x64xf32>
    %cst_33 = arith.constant 0.000000e+00 : f32
    %119 = vector.broadcast %cst_33 : f32 to vector<8x64xf32>
    %120 = arith.cmpf one, %118, %119 : vector<8x64xf32>
    %121 = arith.select %120, %115, %82 : vector<8x64xi1>, vector<8x64xf32>
    %c3_i32 = arith.constant 3 : i32
    %122 = arith.index_cast %c3_i32 : i32 to index
    %c0_34 = arith.constant 0 : index
    %c0_35 = arith.constant 0 : index
    %123 = vector.load %arg1[%122, %c0_34, %c0_35] : memref<8x8x192xf32, #tpu.memory_space<vmem>>, vector<1x8x192xf32>
    %124 = vector.shape_cast %123 : vector<1x8x192xf32> to vector<8x192xf32>
    %125 = arith.truncf %121 : vector<8x64xf32> to vector<8x64xbf16>
    %cst_36 = arith.constant dense<0.000000e+00> : vector<8x192xf32>
    %126 = tpu.matmul %125, %0, %cst_36 {dimension_numbers = #tpu.dot_dimension_numbers<[1], [0], [0], [1], [0, 0, 1, 1], [], []>} : vector<8x64xbf16>, vector<64x192xbf16>, vector<8x192xf32> -> vector<8x192xf32>
    %127 = vector.broadcast %1 : vector<1x192xf32> to vector<8x192xf32>
    %128 = arith.addf %126, %127 : vector<8x192xf32>
    %129 = vector.extract_strided_slice %124 {offsets = [0, 0], sizes = [8, 64], strides = [1, 1]} : vector<8x192xf32> to vector<8x64xf32>
    %130 = vector.extract_strided_slice %128 {offsets = [0, 0], sizes = [8, 64], strides = [1, 1]} : vector<8x192xf32> to vector<8x64xf32>
    %131 = arith.addf %129, %130 : vector<8x64xf32>
    %132 = arith.negf %131 : vector<8x64xf32>
    %133 = math.exp %132 : vector<8x64xf32>
    %cst_37 = arith.constant 1.000000e+00 : f32
    %134 = vector.broadcast %cst_37 : f32 to vector<8x64xf32>
    %135 = arith.addf %134, %133 : vector<8x64xf32>
    %136 = arith.divf %134, %135 : vector<8x64xf32>
    %137 = vector.extract_strided_slice %124 {offsets = [0, 64], sizes = [8, 64], strides = [1, 1]} : vector<8x192xf32> to vector<8x64xf32>
    %138 = vector.extract_strided_slice %128 {offsets = [0, 64], sizes = [8, 64], strides = [1, 1]} : vector<8x192xf32> to vector<8x64xf32>
    %139 = arith.addf %137, %138 : vector<8x64xf32>
    %140 = arith.negf %139 : vector<8x64xf32>
    %141 = math.exp %140 : vector<8x64xf32>
    %cst_38 = arith.constant 1.000000e+00 : f32
    %142 = vector.broadcast %cst_38 : f32 to vector<8x64xf32>
    %143 = arith.addf %142, %141 : vector<8x64xf32>
    %144 = arith.divf %142, %143 : vector<8x64xf32>
    %145 = vector.extract_strided_slice %124 {offsets = [0, 128], sizes = [8, 64], strides = [1, 1]} : vector<8x192xf32> to vector<8x64xf32>
    %146 = vector.extract_strided_slice %128 {offsets = [0, 128], sizes = [8, 64], strides = [1, 1]} : vector<8x192xf32> to vector<8x64xf32>
    %147 = arith.mulf %136, %146 : vector<8x64xf32>
    %148 = arith.addf %145, %147 : vector<8x64xf32>
    %149 = math.tanh %148 : vector<8x64xf32>
    %cst_39 = arith.constant 1.000000e+00 : f32
    %150 = vector.broadcast %cst_39 : f32 to vector<8x64xf32>
    %151 = arith.subf %150, %144 : vector<8x64xf32>
    %152 = arith.mulf %151, %149 : vector<8x64xf32>
    %153 = arith.mulf %144, %121 : vector<8x64xf32>
    %154 = arith.addf %152, %153 : vector<8x64xf32>
    %155 = arith.index_cast %c3_i32 : i32 to index
    %c0_40 = arith.constant 0 : index
    %c0_41 = arith.constant 0 : index
    %156 = vector.load %arg2[%155, %c0_40, %c0_41] : memref<8x8x64xf32, #tpu.memory_space<vmem>>, vector<1x8x64xf32>
    %157 = vector.shape_cast %156 : vector<1x8x64xf32> to vector<8x64xf32>
    %cst_42 = arith.constant 0.000000e+00 : f32
    %158 = vector.broadcast %cst_42 : f32 to vector<8x64xf32>
    %159 = arith.cmpf one, %157, %158 : vector<8x64xf32>
    %160 = arith.select %159, %154, %121 : vector<8x64xi1>, vector<8x64xf32>
    %c4_i32 = arith.constant 4 : i32
    %161 = arith.index_cast %c4_i32 : i32 to index
    %c0_43 = arith.constant 0 : index
    %c0_44 = arith.constant 0 : index
    %162 = vector.load %arg1[%161, %c0_43, %c0_44] : memref<8x8x192xf32, #tpu.memory_space<vmem>>, vector<1x8x192xf32>
    %163 = vector.shape_cast %162 : vector<1x8x192xf32> to vector<8x192xf32>
    %164 = arith.truncf %160 : vector<8x64xf32> to vector<8x64xbf16>
    %cst_45 = arith.constant dense<0.000000e+00> : vector<8x192xf32>
    %165 = tpu.matmul %164, %0, %cst_45 {dimension_numbers = #tpu.dot_dimension_numbers<[1], [0], [0], [1], [0, 0, 1, 1], [], []>} : vector<8x64xbf16>, vector<64x192xbf16>, vector<8x192xf32> -> vector<8x192xf32>
    %166 = vector.broadcast %1 : vector<1x192xf32> to vector<8x192xf32>
    %167 = arith.addf %165, %166 : vector<8x192xf32>
    %168 = vector.extract_strided_slice %163 {offsets = [0, 0], sizes = [8, 64], strides = [1, 1]} : vector<8x192xf32> to vector<8x64xf32>
    %169 = vector.extract_strided_slice %167 {offsets = [0, 0], sizes = [8, 64], strides = [1, 1]} : vector<8x192xf32> to vector<8x64xf32>
    %170 = arith.addf %168, %169 : vector<8x64xf32>
    %171 = arith.negf %170 : vector<8x64xf32>
    %172 = math.exp %171 : vector<8x64xf32>
    %cst_46 = arith.constant 1.000000e+00 : f32
    %173 = vector.broadcast %cst_46 : f32 to vector<8x64xf32>
    %174 = arith.addf %173, %172 : vector<8x64xf32>
    %175 = arith.divf %173, %174 : vector<8x64xf32>
    %176 = vector.extract_strided_slice %163 {offsets = [0, 64], sizes = [8, 64], strides = [1, 1]} : vector<8x192xf32> to vector<8x64xf32>
    %177 = vector.extract_strided_slice %167 {offsets = [0, 64], sizes = [8, 64], strides = [1, 1]} : vector<8x192xf32> to vector<8x64xf32>
    %178 = arith.addf %176, %177 : vector<8x64xf32>
    %179 = arith.negf %178 : vector<8x64xf32>
    %180 = math.exp %179 : vector<8x64xf32>
    %cst_47 = arith.constant 1.000000e+00 : f32
    %181 = vector.broadcast %cst_47 : f32 to vector<8x64xf32>
    %182 = arith.addf %181, %180 : vector<8x64xf32>
    %183 = arith.divf %181, %182 : vector<8x64xf32>
    %184 = vector.extract_strided_slice %163 {offsets = [0, 128], sizes = [8, 64], strides = [1, 1]} : vector<8x192xf32> to vector<8x64xf32>
    %185 = vector.extract_strided_slice %167 {offsets = [0, 128], sizes = [8, 64], strides = [1, 1]} : vector<8x192xf32> to vector<8x64xf32>
    %186 = arith.mulf %175, %185 : vector<8x64xf32>
    %187 = arith.addf %184, %186 : vector<8x64xf32>
    %188 = math.tanh %187 : vector<8x64xf32>
    %cst_48 = arith.constant 1.000000e+00 : f32
    %189 = vector.broadcast %cst_48 : f32 to vector<8x64xf32>
    %190 = arith.subf %189, %183 : vector<8x64xf32>
    %191 = arith.mulf %190, %188 : vector<8x64xf32>
    %192 = arith.mulf %183, %160 : vector<8x64xf32>
    %193 = arith.addf %191, %192 : vector<8x64xf32>
    %194 = arith.index_cast %c4_i32 : i32 to index
    %c0_49 = arith.constant 0 : index
    %c0_50 = arith.constant 0 : index
    %195 = vector.load %arg2[%194, %c0_49, %c0_50] : memref<8x8x64xf32, #tpu.memory_space<vmem>>, vector<1x8x64xf32>
    %196 = vector.shape_cast %195 : vector<1x8x64xf32> to vector<8x64xf32>
    %cst_51 = arith.constant 0.000000e+00 : f32
    %197 = vector.broadcast %cst_51 : f32 to vector<8x64xf32>
    %198 = arith.cmpf one, %196, %197 : vector<8x64xf32>
    %199 = arith.select %198, %193, %160 : vector<8x64xi1>, vector<8x64xf32>
    %c5_i32 = arith.constant 5 : i32
    %200 = arith.index_cast %c5_i32 : i32 to index
    %c0_52 = arith.constant 0 : index
    %c0_53 = arith.constant 0 : index
    %201 = vector.load %arg1[%200, %c0_52, %c0_53] : memref<8x8x192xf32, #tpu.memory_space<vmem>>, vector<1x8x192xf32>
    %202 = vector.shape_cast %201 : vector<1x8x192xf32> to vector<8x192xf32>
    %203 = arith.truncf %199 : vector<8x64xf32> to vector<8x64xbf16>
    %cst_54 = arith.constant dense<0.000000e+00> : vector<8x192xf32>
    %204 = tpu.matmul %203, %0, %cst_54 {dimension_numbers = #tpu.dot_dimension_numbers<[1], [0], [0], [1], [0, 0, 1, 1], [], []>} : vector<8x64xbf16>, vector<64x192xbf16>, vector<8x192xf32> -> vector<8x192xf32>
    %205 = vector.broadcast %1 : vector<1x192xf32> to vector<8x192xf32>
    %206 = arith.addf %204, %205 : vector<8x192xf32>
    %207 = vector.extract_strided_slice %202 {offsets = [0, 0], sizes = [8, 64], strides = [1, 1]} : vector<8x192xf32> to vector<8x64xf32>
    %208 = vector.extract_strided_slice %206 {offsets = [0, 0], sizes = [8, 64], strides = [1, 1]} : vector<8x192xf32> to vector<8x64xf32>
    %209 = arith.addf %207, %208 : vector<8x64xf32>
    %210 = arith.negf %209 : vector<8x64xf32>
    %211 = math.exp %210 : vector<8x64xf32>
    %cst_55 = arith.constant 1.000000e+00 : f32
    %212 = vector.broadcast %cst_55 : f32 to vector<8x64xf32>
    %213 = arith.addf %212, %211 : vector<8x64xf32>
    %214 = arith.divf %212, %213 : vector<8x64xf32>
    %215 = vector.extract_strided_slice %202 {offsets = [0, 64], sizes = [8, 64], strides = [1, 1]} : vector<8x192xf32> to vector<8x64xf32>
    %216 = vector.extract_strided_slice %206 {offsets = [0, 64], sizes = [8, 64], strides = [1, 1]} : vector<8x192xf32> to vector<8x64xf32>
    %217 = arith.addf %215, %216 : vector<8x64xf32>
    %218 = arith.negf %217 : vector<8x64xf32>
    %219 = math.exp %218 : vector<8x64xf32>
    %cst_56 = arith.constant 1.000000e+00 : f32
    %220 = vector.broadcast %cst_56 : f32 to vector<8x64xf32>
    %221 = arith.addf %220, %219 : vector<8x64xf32>
    %222 = arith.divf %220, %221 : vector<8x64xf32>
    %223 = vector.extract_strided_slice %202 {offsets = [0, 128], sizes = [8, 64], strides = [1, 1]} : vector<8x192xf32> to vector<8x64xf32>
    %224 = vector.extract_strided_slice %206 {offsets = [0, 128], sizes = [8, 64], strides = [1, 1]} : vector<8x192xf32> to vector<8x64xf32>
    %225 = arith.mulf %214, %224 : vector<8x64xf32>
    %226 = arith.addf %223, %225 : vector<8x64xf32>
    %227 = math.tanh %226 : vector<8x64xf32>
    %cst_57 = arith.constant 1.000000e+00 : f32
    %228 = vector.broadcast %cst_57 : f32 to vector<8x64xf32>
    %229 = arith.subf %228, %222 : vector<8x64xf32>
    %230 = arith.mulf %229, %227 : vector<8x64xf32>
    %231 = arith.mulf %222, %199 : vector<8x64xf32>
    %232 = arith.addf %230, %231 : vector<8x64xf32>
    %233 = arith.index_cast %c5_i32 : i32 to index
    %c0_58 = arith.constant 0 : index
    %c0_59 = arith.constant 0 : index
    %234 = vector.load %arg2[%233, %c0_58, %c0_59] : memref<8x8x64xf32, #tpu.memory_space<vmem>>, vector<1x8x64xf32>
    %235 = vector.shape_cast %234 : vector<1x8x64xf32> to vector<8x64xf32>
    %cst_60 = arith.constant 0.000000e+00 : f32
    %236 = vector.broadcast %cst_60 : f32 to vector<8x64xf32>
    %237 = arith.cmpf one, %235, %236 : vector<8x64xf32>
    %238 = arith.select %237, %232, %199 : vector<8x64xi1>, vector<8x64xf32>
    %c6_i32 = arith.constant 6 : i32
    %239 = arith.index_cast %c6_i32 : i32 to index
    %c0_61 = arith.constant 0 : index
    %c0_62 = arith.constant 0 : index
    %240 = vector.load %arg1[%239, %c0_61, %c0_62] : memref<8x8x192xf32, #tpu.memory_space<vmem>>, vector<1x8x192xf32>
    %241 = vector.shape_cast %240 : vector<1x8x192xf32> to vector<8x192xf32>
    %242 = arith.truncf %238 : vector<8x64xf32> to vector<8x64xbf16>
    %cst_63 = arith.constant dense<0.000000e+00> : vector<8x192xf32>
    %243 = tpu.matmul %242, %0, %cst_63 {dimension_numbers = #tpu.dot_dimension_numbers<[1], [0], [0], [1], [0, 0, 1, 1], [], []>} : vector<8x64xbf16>, vector<64x192xbf16>, vector<8x192xf32> -> vector<8x192xf32>
    %244 = vector.broadcast %1 : vector<1x192xf32> to vector<8x192xf32>
    %245 = arith.addf %243, %244 : vector<8x192xf32>
    %246 = vector.extract_strided_slice %241 {offsets = [0, 0], sizes = [8, 64], strides = [1, 1]} : vector<8x192xf32> to vector<8x64xf32>
    %247 = vector.extract_strided_slice %245 {offsets = [0, 0], sizes = [8, 64], strides = [1, 1]} : vector<8x192xf32> to vector<8x64xf32>
    %248 = arith.addf %246, %247 : vector<8x64xf32>
    %249 = arith.negf %248 : vector<8x64xf32>
    %250 = math.exp %249 : vector<8x64xf32>
    %cst_64 = arith.constant 1.000000e+00 : f32
    %251 = vector.broadcast %cst_64 : f32 to vector<8x64xf32>
    %252 = arith.addf %251, %250 : vector<8x64xf32>
    %253 = arith.divf %251, %252 : vector<8x64xf32>
    %254 = vector.extract_strided_slice %241 {offsets = [0, 64], sizes = [8, 64], strides = [1, 1]} : vector<8x192xf32> to vector<8x64xf32>
    %255 = vector.extract_strided_slice %245 {offsets = [0, 64], sizes = [8, 64], strides = [1, 1]} : vector<8x192xf32> to vector<8x64xf32>
    %256 = arith.addf %254, %255 : vector<8x64xf32>
    %257 = arith.negf %256 : vector<8x64xf32>
    %258 = math.exp %257 : vector<8x64xf32>
    %cst_65 = arith.constant 1.000000e+00 : f32
    %259 = vector.broadcast %cst_65 : f32 to vector<8x64xf32>
    %260 = arith.addf %259, %258 : vector<8x64xf32>
    %261 = arith.divf %259, %260 : vector<8x64xf32>
    %262 = vector.extract_strided_slice %241 {offsets = [0, 128], sizes = [8, 64], strides = [1, 1]} : vector<8x192xf32> to vector<8x64xf32>
    %263 = vector.extract_strided_slice %245 {offsets = [0, 128], sizes = [8, 64], strides = [1, 1]} : vector<8x192xf32> to vector<8x64xf32>
    %264 = arith.mulf %253, %263 : vector<8x64xf32>
    %265 = arith.addf %262, %264 : vector<8x64xf32>
    %266 = math.tanh %265 : vector<8x64xf32>
    %cst_66 = arith.constant 1.000000e+00 : f32
    %267 = vector.broadcast %cst_66 : f32 to vector<8x64xf32>
    %268 = arith.subf %267, %261 : vector<8x64xf32>
    %269 = arith.mulf %268, %266 : vector<8x64xf32>
    %270 = arith.mulf %261, %238 : vector<8x64xf32>
    %271 = arith.addf %269, %270 : vector<8x64xf32>
    %272 = arith.index_cast %c6_i32 : i32 to index
    %c0_67 = arith.constant 0 : index
    %c0_68 = arith.constant 0 : index
    %273 = vector.load %arg2[%272, %c0_67, %c0_68] : memref<8x8x64xf32, #tpu.memory_space<vmem>>, vector<1x8x64xf32>
    %274 = vector.shape_cast %273 : vector<1x8x64xf32> to vector<8x64xf32>
    %cst_69 = arith.constant 0.000000e+00 : f32
    %275 = vector.broadcast %cst_69 : f32 to vector<8x64xf32>
    %276 = arith.cmpf one, %274, %275 : vector<8x64xf32>
    %277 = arith.select %276, %271, %238 : vector<8x64xi1>, vector<8x64xf32>
    %c7_i32 = arith.constant 7 : i32
    %278 = arith.index_cast %c7_i32 : i32 to index
    %c0_70 = arith.constant 0 : index
    %c0_71 = arith.constant 0 : index
    %279 = vector.load %arg1[%278, %c0_70, %c0_71] : memref<8x8x192xf32, #tpu.memory_space<vmem>>, vector<1x8x192xf32>
    %280 = vector.shape_cast %279 : vector<1x8x192xf32> to vector<8x192xf32>
    %281 = arith.truncf %277 : vector<8x64xf32> to vector<8x64xbf16>
    %cst_72 = arith.constant dense<0.000000e+00> : vector<8x192xf32>
    %282 = tpu.matmul %281, %0, %cst_72 {dimension_numbers = #tpu.dot_dimension_numbers<[1], [0], [0], [1], [0, 0, 1, 1], [], []>} : vector<8x64xbf16>, vector<64x192xbf16>, vector<8x192xf32> -> vector<8x192xf32>
    %283 = vector.broadcast %1 : vector<1x192xf32> to vector<8x192xf32>
    %284 = arith.addf %282, %283 : vector<8x192xf32>
    %285 = vector.extract_strided_slice %280 {offsets = [0, 0], sizes = [8, 64], strides = [1, 1]} : vector<8x192xf32> to vector<8x64xf32>
    %286 = vector.extract_strided_slice %284 {offsets = [0, 0], sizes = [8, 64], strides = [1, 1]} : vector<8x192xf32> to vector<8x64xf32>
    %287 = arith.addf %285, %286 : vector<8x64xf32>
    %288 = arith.negf %287 : vector<8x64xf32>
    %289 = math.exp %288 : vector<8x64xf32>
    %cst_73 = arith.constant 1.000000e+00 : f32
    %290 = vector.broadcast %cst_73 : f32 to vector<8x64xf32>
    %291 = arith.addf %290, %289 : vector<8x64xf32>
    %292 = arith.divf %290, %291 : vector<8x64xf32>
    %293 = vector.extract_strided_slice %280 {offsets = [0, 64], sizes = [8, 64], strides = [1, 1]} : vector<8x192xf32> to vector<8x64xf32>
    %294 = vector.extract_strided_slice %284 {offsets = [0, 64], sizes = [8, 64], strides = [1, 1]} : vector<8x192xf32> to vector<8x64xf32>
    %295 = arith.addf %293, %294 : vector<8x64xf32>
    %296 = arith.negf %295 : vector<8x64xf32>
    %297 = math.exp %296 : vector<8x64xf32>
    %cst_74 = arith.constant 1.000000e+00 : f32
    %298 = vector.broadcast %cst_74 : f32 to vector<8x64xf32>
    %299 = arith.addf %298, %297 : vector<8x64xf32>
    %300 = arith.divf %298, %299 : vector<8x64xf32>
    %301 = vector.extract_strided_slice %280 {offsets = [0, 128], sizes = [8, 64], strides = [1, 1]} : vector<8x192xf32> to vector<8x64xf32>
    %302 = vector.extract_strided_slice %284 {offsets = [0, 128], sizes = [8, 64], strides = [1, 1]} : vector<8x192xf32> to vector<8x64xf32>
    %303 = arith.mulf %292, %302 : vector<8x64xf32>
    %304 = arith.addf %301, %303 : vector<8x64xf32>
    %305 = math.tanh %304 : vector<8x64xf32>
    %cst_75 = arith.constant 1.000000e+00 : f32
    %306 = vector.broadcast %cst_75 : f32 to vector<8x64xf32>
    %307 = arith.subf %306, %300 : vector<8x64xf32>
    %308 = arith.mulf %307, %305 : vector<8x64xf32>
    %309 = arith.mulf %300, %277 : vector<8x64xf32>
    %310 = arith.addf %308, %309 : vector<8x64xf32>
    %311 = arith.index_cast %c7_i32 : i32 to index
    %c0_76 = arith.constant 0 : index
    %c0_77 = arith.constant 0 : index
    %312 = vector.load %arg2[%311, %c0_76, %c0_77] : memref<8x8x64xf32, #tpu.memory_space<vmem>>, vector<1x8x64xf32>
    %313 = vector.shape_cast %312 : vector<1x8x64xf32> to vector<8x64xf32>
    %cst_78 = arith.constant 0.000000e+00 : f32
    %314 = vector.broadcast %cst_78 : f32 to vector<8x64xf32>
    %315 = arith.cmpf one, %313, %314 : vector<8x64xf32>
    %316 = arith.select %315, %310, %277 : vector<8x64xi1>, vector<8x64xf32>
    %c8_i32 = arith.constant 8 : i32
    %317 = arith.truncf %316 : vector<8x64xf32> to vector<8x64xbf16>
    %cst_79 = arith.constant dense<0.000000e+00> : vector<8x5xf32>
    %318 = tpu.matmul %317, %2, %cst_79 {dimension_numbers = #tpu.dot_dimension_numbers<[1], [0], [0], [1], [0, 0, 1, 1], [], []>} : vector<8x64xbf16>, vector<64x5xbf16>, vector<8x5xf32> -> vector<8x5xf32>
    %319 = vector.broadcast %3 : vector<1x5xf32> to vector<8x5xf32>
    %320 = arith.addf %318, %319 : vector<8x5xf32>
    %321 = arith.negf %320 : vector<8x5xf32>
    %322 = math.exp %321 : vector<8x5xf32>
    %cst_80 = arith.constant 1.000000e+00 : f32
    %323 = vector.broadcast %cst_80 : f32 to vector<8x5xf32>
    %324 = arith.addf %323, %322 : vector<8x5xf32>
    %325 = arith.divf %323, %324 : vector<8x5xf32>
    %c0_81 = arith.constant 0 : index
    %c0_82 = arith.constant 0 : index
    %326 = vector.load %arg7[%c0_81, %c0_82] : memref<8x5xf32, #tpu.memory_space<vmem>>, vector<8x5xf32>
    tpu.vector_store %arg7[%c0_81, %c0_82], %325 {strides = array<i32>} : memref<8x5xf32, #tpu.memory_space<vmem>>, vector<8x5xf32>,
    return
  }
  func.func @transform_0(%arg0: i32) -> (i32, i32, i32) {
    %c0_i32 = arith.constant 0 : i32
    %c0_i32_0 = arith.constant 0 : i32
    %c0_i32_1 = arith.constant 0 : i32
    return %c0_i32, %arg0, %c0_i32_0 : i32, i32, i32
  }
  func.func @transform_1(%arg0: i32) -> (i32, i32, i32) {
    %c0_i32 = arith.constant 0 : i32
    %c0_i32_0 = arith.constant 0 : i32
    %c0_i32_1 = arith.constant 0 : i32
    return %c0_i32, %arg0, %c0_i32_0 : i32, i32, i32
  }
  func.func @transform_2(%arg0: i32) -> (i32, i32) {
    %c0_i32 = arith.constant 0 : i32
    %c0_i32_0 = arith.constant 0 : i32
    %c0_i32_1 = arith.constant 0 : i32
    return %c0_i32, %c0_i32_0 : i32, i32
  }
  func.func @transform_3(%arg0: i32) -> (i32, i32) {
    %c0_i32 = arith.constant 0 : i32
    %c0_i32_0 = arith.constant 0 : i32
    %c0_i32_1 = arith.constant 0 : i32
    return %c0_i32, %c0_i32_0 : i32, i32
  }
  func.func @transform_4(%arg0: i32) -> (i32, i32) {
    %c0_i32 = arith.constant 0 : i32
    %c0_i32_0 = arith.constant 0 : i32
    %c0_i32_1 = arith.constant 0 : i32
    return %c0_i32, %c0_i32_0 : i32, i32
  }
  func.func @transform_5(%arg0: i32) -> (i32, i32) {
    %c0_i32 = arith.constant 0 : i32
    %c0_i32_0 = arith.constant 0 : i32
    %c0_i32_1 = arith.constant 0 : i32
    return %c0_i32, %c0_i32_0 : i32, i32
  }
  func.func @transform_6(%arg0: i32) -> (i32, i32) {
    %c0_i32 = arith.constant 0 : i32
    %c0_i32_0 = arith.constant 0 : i32
    return %arg0, %c0_i32 : i32, i32
  }
}

</mosaic_0001>

<bundles_post_ra>
// kernel: rnn_classifier_forward.1
= control target key start
LH: loop header
LB: loop body
LE: loop exit
PB: predicated region body
PF: predicated region fallthrough
CT: control target
= control target key end

     0   :  { %v937_v1 = vmov 0   ;;  %v45_v9 = vlaneseq  ;;  %s938_s17 = smov 64   ;;  %vm95_vm1 = vcmask 523264   ;;  %vm940_vm8 = vmmov 0   ;;  %s1233_s2 = inlined_call_operand.vmem [shape: bf16[64,192], index: 2, kind: input, shape index: {}]   ;;  %s1234_s3 = inlined_call_operand.vmem [shape: f32[1,192], index: 3, kind: input, shape index: {}]   ;;  %s1235_s0 = inlined_call_operand.vmem [shape: f32[8,8,192], index: 0, kind: input, shape index: {}]   ;;  %s1236_s1 = inlined_call_operand.vmem [shape: f32[8,8,64], index: 1, kind: input, shape index: {}]   ;;  %s1237_s4 = inlined_call_operand.vmem [shape: bf16[64,5], index: 4, kind: input, shape index: {}]   ;;  %s1238_s5 = inlined_call_operand.vmem [shape: f32[1,5], index: 5, kind: input, shape index: {}]   ;;  %s1239_s6 = inlined_call_operand.vmem [shape: f32[8,5], index: 6, kind: output, shape index: {}]  }
   0x1   :  { %v979_v0 = vld [vmem:[%s1233_s2 + $0x4] ss:$8 sps:$4 sm:$0xff]   ;;  %131 = vmatprep.mubr.bf16.mxu0 %v937_v1  ;;  %204 = vmatprep.mubr.bf16.mxu1 %v937_v1  ;;  %v986_v2 = vld [vmem:[%s1233_s2] ss:$8 sps:$4 sm:$0xff]   ;;  %v992_v3 = vld [vmem:[%s1233_s2 + $0x14] ss:$8 sps:$4 sm:$0xff]  }
   0x2   :  { %99 = vmatprep.subr.bf16.mxu0 %v979_v0  ;;  %172 = vmatprep.subr.bf16.mxu1 %v979_v0  ;;  %v999_v4 = vld [vmem:[%s1233_s2 + $0x10] ss:$8 sps:$4 sm:$0xff]   ;;  %v1006_v5 = vld [vmem:[%s1233_s2 + $0x24] ss:$8 sps:$4 sm:$0xff]   ;;  %v1013_v6 = vld [vmem:[%s1233_s2 + $0x20] ss:$8 sps:$4 sm:$0xff]  }
   0x3   :  { %100 = vmatpush1.bf16.msra.mxu0 %v986_v2  ;;  %173 = vmatpush1.bf16.msra.mxu1 %v986_v2  ;;  %v1020_v7 = vld [vmem:[%s1233_s2 + $0x34] ss:$8 sps:$4 sm:$0xff]   ;;  %v1027_v8 = vld [vmem:[%s1233_s2 + $0x30] ss:$8 sps:$4 sm:$0xff]   ;;  %v46_v10 = vshrl.u32 %v45_v9, 7  ;;  %v42_v14 = vld [vmem:[%s1235_s0] sm:$0xff] }
   0x4   :  { %101 = vmatprep.subr.bf16.mxu0 %v992_v3  ;;  %174 = vmatprep.subr.bf16.mxu1 %v992_v3  ;;  %v32_v12 = vld [vmem:[%s1234_s3] sm:$0x3]  ;;  %v43_v28 = vld [vmem:[%s1235_s0 + $0x8] sm:$0xff]  ;;  %v806_v41 = vld [vmem:[%s1235_s0 + $0x10] sm:$0xff]  ;;  %vm791_vm10 = vcmask 39936  }
   0x5   :  { %v47_v11 = vsub.s32 0, %v46_v10  ;;  %v51_v24 = vsub.s32 1, %v46_v10  ;;  %v158_v37 = vld [vmem:[%s1236_s1] sm:$0xff]  ;;  %v807_v53 = vld [vmem:[%s1235_s0 + $0x18] sm:$0xff]  ;;  %v810_v63 = vld [vmem:[%s1236_s1 + $0x8] sm:$0xff] }
   0x6   :  { %vm159_vm0 = vcmp.ne.f32.partialorder %v158_v37, 0.0  ;;  %vm237_vm2 = vcmp.ne.f32.partialorder %v810_v63, 0.0 }
   0x7   :  { %102 = vmatpush1.bf16.msra.mxu0 %v999_v4  ;;  %175 = vmatpush1.bf16.msra.mxu1 %v999_v4  ;;  %v1049_v13 = vrot.slane %v32_v12, %v47_v11  ;;  %v1055_v25 = vrot.slane %v32_v12, %v51_v24  ;;  %v811_v12 = vld [vmem:[%s1235_s0 + $0x20] sm:$0xff] }
   0x8   :  { %103 = vmatprep.subr.bf16.mxu0 %v1006_v5  ;;  %176 = vmatprep.subr.bf16.mxu1 %v1006_v5 }
   0xb   :  { %104 = vmatpush1.bf16.msra.mxu0 %v1013_v6  ;;  %177 = vmatpush1.bf16.msra.mxu1 %v1013_v6 }
   0xc   :  { %105 = vmatprep.subr.bf16.mxu0 %v1020_v7  ;;  %178 = vmatprep.subr.bf16.mxu1 %v1020_v7 }
   0xf   :  { %106 = vmatpush1.bf16.msra.mxu0 %v1027_v8  ;;  %179 = vmatpush1.bf16.msra.mxu1 %v1027_v8 }
  0x10   :  { %250 = vmatprep.subr.bf16.mxu0 %v979_v0  ;;  %328 = vmatprep.subr.bf16.mxu1 %v979_v0 }
  0x12   :  { %132 = vmatmul.mubr.bf16.vlgmr.msra.gmra.mrb[0].mxu0 %v937_v1 }
  0x13   :  { %251 = vmatpush1.bf16.msra.mxu0 %v986_v2  ;;  %282 = vmatprep.mubr.bf16.mxu0 %v937_v1 }
  0x14   :  { %252 = vmatprep.subr.bf16.mxu0 %v992_v3 }
  0x17   :  { %253 = vmatpush1.bf16.msra.mxu0 %v999_v4 }
  0x18   :  { %254 = vmatprep.subr.bf16.mxu0 %v1006_v5 }
  0x1b   :  { %255 = vmatpush1.bf16.msra.mxu0 %v1013_v6 }
  0x1c   :  { %256 = vmatprep.subr.bf16.mxu0 %v1020_v7 }
  0x1f   :  { %257 = vmatpush1.bf16.msra.mxu0 %v1027_v8 }
  0x20   :  { %406 = vmatprep.subr.bf16.mxu0 %v979_v0 }
  0xe5   :  { %v133_v15 = vpop.f32.mrb[0].mxu0 }
  0xe6   :  { %v134_v16 = vadd.f32 %v133_v15, %v1049_v13  ;;  %v135_v17 = vpop.f32.mrb[1].mxu0 }
  0xe7   :  { %v137_v18 = vpop.f32.mrb[2].mxu0  ;;  %v136_v26 = vadd.f32 %v135_v17, %v1055_v25 }
  0xe8   :  { %v140_v19 = vadd.f32 %v134_v16, %v42_v14  ;;  %v138_v20 = vpop.f32.mrb[3].mxu0 }
  0xea   :  { %v805_v21 = vmul.f32 -1.442695, %v140_v19 }
  0xec   :  { %885 = vpow2.f32 %v805_v21 }
  0xf6   :  { %v886_v22 = vpop.eup %885 }
  0xf7   :  { %v144_v23 = vadd.f32 1.0, %v886_v22 }
  0xf9   :  { %887 = vrcp.f32 %v144_v23 }
 0x103   :  { %v888_v27 = vpop.eup %887 }
 0x104   :  { %v147_v29 = vmul.f32 %v888_v27, %v136_v26  ;;  %v150_v32 = vsub.f32 1.0, %v888_v27  ;;  %v156_v34 = vmul.f32 0.0, %v888_v27  ;;  %v812_v26 = vld [vmem:[%s1235_s0 + $0x28] sm:$0xff] }
 0x106   :  { %v148_v30 = vadd.f32 %v147_v29, %v43_v28 }
 0x108   :  { %889 = vtanh.f32 %v148_v30 }
 0x112   :  { %v890_v31 = vpop.eup %889 }
 0x113   :  { %152 = vrot.lane.b32.xlu0 %v890_v31, %s938_s17 }
 0x185   :  { %v153_v33 = vpop.permute.xlu0 %152 }
 0x186   :  { %v155_v35 = vmul.f32 %v153_v33, %v150_v32 }
 0x188   :  { %v157_v36 = vadd.f32 %v156_v34, %v155_v35 }
 0x18a   :  { %161 = vrot.lane.b32.xlu0 %v157_v36, %s938_s17  ;;  %v815_v36 = vld [vmem:[%s1236_s1 + $0x10] sm:$0xff] }
 0x18b   :  { %vm315_vm3 = vcmp.ne.f32.partialorder %v815_v36, 0.0 }
 0x1fc   :  { %v162_v38 = vpop.permute.xlu0 %161 }
 0x1fd   :  { %v164_v39 = vsel %vm159_vm0, %v162_v38, 0.0 }
 0x1fe   :  { %v168_v40 = vpack.c.bf16 %v164_v39, %v164_v39 }
 0x200   :  { %808 = vmatmul.mubr.msk.bf16.vlgmr.msra.gmra.mrb[0].mxu1 %vm95_vm1, %v168_v40  ;;  %v816_v40 = vld [vmem:[%s1235_s0 + $0x30] sm:$0xff] }
 0x201   :  { %329 = vmatpush1.bf16.msra.mxu1 %v986_v2  ;;  %360 = vmatprep.mubr.bf16.mxu1 %v937_v1 }
 0x202   :  { %330 = vmatprep.subr.bf16.mxu1 %v992_v3 }
 0x205   :  { %331 = vmatpush1.bf16.msra.mxu1 %v999_v4 }
 0x206   :  { %332 = vmatprep.subr.bf16.mxu1 %v1006_v5 }
 0x209   :  { %333 = vmatpush1.bf16.msra.mxu1 %v1013_v6 }
 0x20a   :  { %334 = vmatprep.subr.bf16.mxu1 %v1020_v7 }
 0x20d   :  { %335 = vmatpush1.bf16.msra.mxu1 %v1027_v8 }
 0x20e   :  { %484 = vmatprep.subr.bf16.mxu1 %v979_v0 }
 0x2d3   :  { %v206_v42 = vpop.f32.mrb[0].mxu1 }
 0x2d4   :  { %v207_v43 = vadd.f32 %v206_v42, %v1049_v13  ;;  %v208_v44 = vpop.f32.mrb[1].mxu1 }
 0x2d5   :  { %v210_v45 = vpop.f32.mrb[2].mxu1  ;;  %v209_v51 = vadd.f32 %v208_v44, %v1055_v25 }
 0x2d6   :  { %v213_v46 = vadd.f32 %v806_v41, %v207_v43  ;;  %v211_v47 = vpop.f32.mrb[3].mxu1 }
 0x2d8   :  { %v809_v48 = vmul.f32 -1.442695, %v213_v46 }
 0x2da   :  { %891 = vpow2.f32 %v809_v48 }
 0x2e4   :  { %v892_v49 = vpop.eup %891 }
 0x2e5   :  { %v217_v50 = vadd.f32 1.0, %v892_v49 }
 0x2e7   :  { %893 = vrcp.f32 %v217_v50 }
 0x2f1   :  { %v894_v52 = vpop.eup %893 }
 0x2f2   :  { %v220_v54 = vmul.f32 %v894_v52, %v209_v51  ;;  %v223_v58 = vsub.f32 1.0, %v894_v52 }
 0x2f4   :  { %v221_v55 = vadd.f32 %v807_v53, %v220_v54 }
 0x2f6   :  { %895 = vtanh.f32 %v221_v55 }
 0x300   :  { %v896_v56 = vpop.eup %895 }
 0x301   :  { %225 = vrot.lane.b32.xlu1 %v896_v56, %s938_s17 }
 0x305   :  { %230 = vrot.lane.b32.xlu1 %v164_v39, %s938_s17 }
 0x373   :  { %v226_v57 = vpop.permute.xlu1 %225 }
 0x374   :  { %v228_v60 = vmul.f32 %v226_v57, %v223_v58 }
 0x377   :  { %v231_v59 = vpop.permute.xlu1 %230 }
 0x378   :  { %v233_v61 = vmul.f32 %v894_v52, %v231_v59 }
 0x37a   :  { %v234_v62 = vadd.f32 %v233_v61, %v228_v60  ;;  %v820_v61 = vld [vmem:[%s1236_s1 + $0x18] sm:$0xff] }
 0x37b   :  { %vm393_vm4 = vcmp.ne.f32.partialorder %v820_v61, 0.0 }
 0x37c   :  { %239 = vrot.lane.b32.xlu0 %v234_v62, %s938_s17 }
 0x3ee   :  { %v240_v9 = vpop.permute.xlu0 %239 }
 0x3ef   :  { %v242_v10 = vsel %vm237_vm2, %v240_v9, %v164_v39 }
 0x3f0   :  { %308 = vrot.lane.b32.xlu0 %v242_v10, %s938_s17  ;;  %v246_v11 = vpack.c.bf16 %v242_v10, %v242_v10 }
 0x3f2   :  { %813 = vmatmul.mubr.msk.bf16.vlgmr.msra.gmra.mrb[4].mxu0 %vm95_vm1, %v246_v11 }
 0x3f3   :  { %407 = vmatpush1.bf16.msra.mxu0 %v986_v2  ;;  %438 = vmatprep.mubr.bf16.mxu0 %v937_v1 }
 0x3f4   :  { %408 = vmatprep.subr.bf16.mxu0 %v992_v3 }
 0x3f7   :  { %409 = vmatpush1.bf16.msra.mxu0 %v999_v4 }
 0x3f8   :  { %410 = vmatprep.subr.bf16.mxu0 %v1006_v5 }
 0x3fb   :  { %411 = vmatpush1.bf16.msra.mxu0 %v1013_v6 }
 0x3fc   :  { %412 = vmatprep.subr.bf16.mxu0 %v1020_v7 }
 0x3ff   :  { %413 = vmatpush1.bf16.msra.mxu0 %v1027_v8 }
 0x400   :  { %562 = vmatprep.subr.bf16.mxu0 %v979_v0 }
 0x462   :  { %v309_v31 = vpop.permute.xlu0 %308 }
 0x4c5   :  { %v284_v14 = vpop.f32.mrb[4].mxu0 }
 0x4c6   :  { %v285_v15 = vadd.f32 %v284_v14, %v1049_v13  ;;  %v286_v16 = vpop.f32.mrb[5].mxu0 }
 0x4c7   :  { %v288_v17 = vpop.f32.mrb[6].mxu0  ;;  %v287_v23 = vadd.f32 %v286_v16, %v1055_v25 }
 0x4c8   :  { %v291_v18 = vadd.f32 %v811_v12, %v285_v15  ;;  %v289_v19 = vpop.f32.mrb[7].mxu0 }
 0x4ca   :  { %v814_v20 = vmul.f32 -1.442695, %v291_v18 }
 0x4cc   :  { %897 = vpow2.f32 %v814_v20 }
 0x4d6   :  { %v898_v21 = vpop.eup %897 }
 0x4d7   :  { %v295_v22 = vadd.f32 1.0, %v898_v21 }
 0x4d9   :  { %899 = vrcp.f32 %v295_v22 }
 0x4e3   :  { %v900_v24 = vpop.eup %899 }
 0x4e4   :  { %v298_v27 = vmul.f32 %v900_v24, %v287_v23  ;;  %v301_v30 = vsub.f32 1.0, %v900_v24  ;;  %v311_v33 = vmul.f32 %v900_v24, %v309_v31  ;;  %v822_v23 = vld [vmem:[%s1235_s0 + $0x48] sm:$0xff] }
 0x4e6   :  { %v299_v28 = vadd.f32 %v812_v26, %v298_v27 }
 0x4e8   :  { %901 = vtanh.f32 %v299_v28 }
 0x4f2   :  { %v902_v29 = vpop.eup %901 }
 0x4f3   :  { %303 = vrot.lane.b32.xlu1 %v902_v29, %s938_s17 }
 0x565   :  { %v304_v32 = vpop.permute.xlu1 %303 }
 0x566   :  { %v306_v34 = vmul.f32 %v304_v32, %v301_v30 }
 0x568   :  { %v312_v35 = vadd.f32 %v311_v33, %v306_v34  ;;  %v825_v34 = vld [vmem:[%s1236_s1 + $0x20] sm:$0xff] }
 0x569   :  { %vm471_vm5 = vcmp.ne.f32.partialorder %v825_v34, 0.0 }
 0x56a   :  { %317 = vrot.lane.b32.xlu1 %v312_v35, %s938_s17 }
 0x5dc   :  { %v318_v37 = vpop.permute.xlu1 %317 }
 0x5dd   :  { %v320_v38 = vsel %vm315_vm3, %v318_v37, %v242_v10  ;;  %v821_v10 = vld [vmem:[%s1235_s0 + $0x40] sm:$0xff] }
 0x5de   :  { %386 = vrot.lane.b32.xlu1 %v320_v38, %s938_s17  ;;  %v324_v39 = vpack.c.bf16 %v320_v38, %v320_v38 }
 0x5e0   :  { %818 = vmatmul.mubr.msk.bf16.vlgmr.msra.gmra.mrb[4].mxu1 %vm95_vm1, %v324_v39 }
 0x5e1   :  { %485 = vmatpush1.bf16.msra.mxu1 %v986_v2  ;;  %516 = vmatprep.mubr.bf16.mxu1 %v937_v1 }
 0x5e2   :  { %486 = vmatprep.subr.bf16.mxu1 %v992_v3 }
 0x5e5   :  { %487 = vmatpush1.bf16.msra.mxu1 %v999_v4 }
 0x5e6   :  { %488 = vmatprep.subr.bf16.mxu1 %v1006_v5 }
 0x5e9   :  { %489 = vmatpush1.bf16.msra.mxu1 %v1013_v6 }
 0x5ea   :  { %490 = vmatprep.subr.bf16.mxu1 %v1020_v7 }
 0x5ed   :  { %491 = vmatpush1.bf16.msra.mxu1 %v1027_v8 }
 0x5ee   :  { %640 = vmatprep.subr.bf16.mxu1 %v979_v0  ;;  %v817_v0 = vld [vmem:[%s1235_s0 + $0x38] sm:$0xff] }
 0x650   :  { %v387_v56 = vpop.permute.xlu1 %386 }
 0x6b3   :  { %v362_v41 = vpop.f32.mrb[4].mxu1 }
 0x6b4   :  { %v363_v42 = vadd.f32 %v362_v41, %v1049_v13  ;;  %v364_v43 = vpop.f32.mrb[5].mxu1 }
 0x6b5   :  { %v366_v44 = vpop.f32.mrb[6].mxu1  ;;  %v365_v50 = vadd.f32 %v364_v43, %v1055_v25 }
 0x6b6   :  { %v369_v45 = vadd.f32 %v816_v40, %v363_v42  ;;  %v367_v46 = vpop.f32.mrb[7].mxu1 }
 0x6b8   :  { %v819_v47 = vmul.f32 -1.442695, %v369_v45 }
 0x6ba   :  { %903 = vpow2.f32 %v819_v47 }
 0x6c4   :  { %v904_v48 = vpop.eup %903 }
 0x6c5   :  { %v373_v49 = vadd.f32 1.0, %v904_v48 }
 0x6c7   :  { %905 = vrcp.f32 %v373_v49 }
 0x6d1   :  { %v906_v51 = vpop.eup %905 }
 0x6d2   :  { %v376_v52 = vmul.f32 %v906_v51, %v365_v50  ;;  %v379_v55 = vsub.f32 1.0, %v906_v51  ;;  %v389_v58 = vmul.f32 %v906_v51, %v387_v56 }
 0x6d4   :  { %v377_v53 = vadd.f32 %v817_v0, %v376_v52  ;;  %v830_v0 = vld [vmem:[%s1236_s1 + $0x28] sm:$0xff] }
 0x6d5   :  { %vm549_vm6 = vcmp.ne.f32.partialorder %v830_v0, 0.0 }
 0x6d6   :  { %907 = vtanh.f32 %v377_v53 }
 0x6e0   :  { %v908_v54 = vpop.eup %907 }
 0x6e1   :  { %381 = vrot.lane.b32.xlu0 %v908_v54, %s938_s17 }
 0x753   :  { %v382_v57 = vpop.permute.xlu0 %381 }
 0x754   :  { %v384_v59 = vmul.f32 %v382_v57, %v379_v55  ;;  %v831_v55 = vld [vmem:[%s1235_s0 + $0x60] sm:$0xff] }
 0x756   :  { %v390_v60 = vadd.f32 %v389_v58, %v384_v59 }
 0x758   :  { %395 = vrot.lane.b32.xlu0 %v390_v60, %s938_s17 }
 0x7ca   :  { %v396_v62 = vpop.permute.xlu0 %395 }
 0x7cb   :  { %v398_v63 = vsel %vm393_vm4, %v396_v62, %v320_v38  ;;  %v826_v38 = vld [vmem:[%s1235_s0 + $0x50] sm:$0xff] }
 0x7cc   :  { %464 = vrot.lane.b32.xlu0 %v398_v63, %s938_s17  ;;  %v402_v9 = vpack.c.bf16 %v398_v63, %v398_v63 }
 0x7ce   :  { %823 = vmatmul.mubr.msk.bf16.vlgmr.msra.gmra.mrb[8].mxu0 %vm95_vm1, %v402_v9 }
 0x7cf   :  { %563 = vmatpush1.bf16.msra.mxu0 %v986_v2  ;;  %594 = vmatprep.mubr.bf16.mxu0 %v937_v1 }
 0x7d0   :  { %564 = vmatprep.subr.bf16.mxu0 %v992_v3 }
 0x7d3   :  { %565 = vmatpush1.bf16.msra.mxu0 %v999_v4 }
 0x7d4   :  { %566 = vmatprep.subr.bf16.mxu0 %v1006_v5 }
 0x7d7   :  { %567 = vmatpush1.bf16.msra.mxu0 %v1013_v6 }
 0x7d8   :  { %568 = vmatprep.subr.bf16.mxu0 %v1020_v7 }
 0x7db   :  { %569 = vmatpush1.bf16.msra.mxu0 %v1027_v8 }
 0x83e   :  { %v465_v29 = vpop.permute.xlu0 %464 }
 0x8a1   :  { %v440_v11 = vpop.f32.mrb[8].mxu0 }
 0x8a2   :  { %v441_v12 = vadd.f32 %v440_v11, %v1049_v13  ;;  %v442_v14 = vpop.f32.mrb[9].mxu0 }
 0x8a3   :  { %v444_v15 = vpop.f32.mrb[10].mxu0  ;;  %v443_v21 = vadd.f32 %v442_v14, %v1055_v25 }
 0x8a4   :  { %v447_v16 = vadd.f32 %v821_v10, %v441_v12  ;;  %v445_v17 = vpop.f32.mrb[11].mxu0  ;;  %v832_v12 = vld [vmem:[%s1235_s0 + $0x68] sm:$0xff] }
 0x8a6   :  { %v824_v18 = vmul.f32 -1.442695, %v447_v16 }
 0x8a8   :  { %909 = vpow2.f32 %v824_v18 }
 0x8b2   :  { %v910_v19 = vpop.eup %909 }
 0x8b3   :  { %v451_v20 = vadd.f32 1.0, %v910_v19 }
 0x8b5   :  { %911 = vrcp.f32 %v451_v20 }
 0x8bf   :  { %v912_v22 = vpop.eup %911 }
 0x8c0   :  { %v454_v24 = vmul.f32 %v912_v22, %v443_v21  ;;  %v457_v28 = vsub.f32 1.0, %v912_v22  ;;  %v467_v31 = vmul.f32 %v912_v22, %v465_v29 }
 0x8c2   :  { %v455_v26 = vadd.f32 %v822_v23, %v454_v24  ;;  %v835_v23 = vld [vmem:[%s1236_s1 + $0x30] sm:$0xff] }
 0x8c3   :  { %vm627_vm7 = vcmp.ne.f32.partialorder %v835_v23, 0.0 }
 0x8c4   :  { %913 = vtanh.f32 %v455_v26 }
 0x8ce   :  { %v914_v27 = vpop.eup %913 }
 0x8cf   :  { %459 = vrot.lane.b32.xlu1 %v914_v27, %s938_s17 }
 0x941   :  { %v460_v30 = vpop.permute.xlu1 %459 }
 0x942   :  { %v462_v32 = vmul.f32 %v460_v30, %v457_v28  ;;  %v836_v28 = vld [vmem:[%s1235_s0 + $0x70] sm:$0xff] }
 0x944   :  { %v468_v33 = vadd.f32 %v467_v31, %v462_v32 }
 0x946   :  { %473 = vrot.lane.b32.xlu1 %v468_v33, %s938_s17 }
 0x9b8   :  { %v474_v35 = vpop.permute.xlu1 %473 }
 0x9b9   :  { %v476_v36 = vsel %vm471_vm5, %v474_v35, %v398_v63 }
 0x9ba   :  { %542 = vrot.lane.b32.xlu1 %v476_v36, %s938_s17  ;;  %v480_v37 = vpack.c.bf16 %v476_v36, %v476_v36 }
 0x9bc   :  { %828 = vmatmul.mubr.msk.bf16.vlgmr.msra.gmra.mrb[8].mxu1 %vm95_vm1, %v480_v37 }
 0x9bd   :  { %641 = vmatpush1.bf16.msra.mxu1 %v986_v2  ;;  %672 = vmatprep.mubr.bf16.mxu1 %v937_v1 }
 0x9be   :  { %642 = vmatprep.subr.bf16.mxu1 %v992_v3 }
 0x9c1   :  { %643 = vmatpush1.bf16.msra.mxu1 %v999_v4 }
 0x9c2   :  { %644 = vmatprep.subr.bf16.mxu1 %v1006_v5 }
 0x9c5   :  { %645 = vmatpush1.bf16.msra.mxu1 %v1013_v6 }
 0x9c6   :  { %646 = vmatprep.subr.bf16.mxu1 %v1020_v7 }
 0x9c9   :  { %647 = vmatpush1.bf16.msra.mxu1 %v1027_v8  ;;  %v827_v8 = vld [vmem:[%s1235_s0 + $0x58] sm:$0xff] }
 0xa2c   :  { %v543_v47 = vpop.permute.xlu1 %542 }
 0xa8f   :  { %v518_v39 = vpop.f32.mrb[8].mxu1 }
 0xa90   :  { %v519_v2 = vadd.f32 %v518_v39, %v1049_v13  ;;  %v520_v1 = vpop.f32.mrb[9].mxu1 }
 0xa91   :  { %v522_v40 = vpop.f32.mrb[10].mxu1  ;;  %v521_v6 = vadd.f32 %v520_v1, %v1055_v25 }
 0xa92   :  { %v525_v3 = vadd.f32 %v826_v38, %v519_v2  ;;  %v523_v41 = vpop.f32.mrb[11].mxu1  ;;  %v837_v2 = vld [vmem:[%s1235_s0 + $0x78] sm:$0xff] }
 0xa93   :  { %v882_v41 = vld [vmem:[%s1237_s4 + $0x8] sm:$0xff]  }
 0xa94   :  { %v829_v4 = vmul.f32 -1.442695, %v525_v3  ;;  %v881_v3 = vld [vmem:[%s1237_s4] sm:$0xff]  }
 0xa96   :  { %915 = vpow2.f32 %v829_v4 }
 0xaa0   :  { %v916_v5 = vpop.eup %915 }
 0xaa1   :  { %v529_v42 = vadd.f32 1.0, %v916_v5  ;;  %v884_v5 = vld [vmem:[%s1237_s4 + $0x18] sm:$0xff]  }
 0xaa3   :  { %917 = vrcp.f32 %v529_v42 }
 0xaad   :  { %v918_v7 = vpop.eup %917 }
 0xaae   :  { %v532_v43 = vmul.f32 %v918_v7, %v521_v6  ;;  %v535_v46 = vsub.f32 1.0, %v918_v7  ;;  %v545_v49 = vmul.f32 %v918_v7, %v543_v47 }
 0xab0   :  { %v533_v44 = vadd.f32 %v827_v8, %v532_v43 }
 0xab2   :  { %919 = vtanh.f32 %v533_v44 }
 0xabc   :  { %v920_v45 = vpop.eup %919 }
 0xabd   :  { %537 = vrot.lane.b32.xlu0 %v920_v45, %s938_s17  ;;  %v840_v45 = vld [vmem:[%s1236_s1 + $0x38] sm:$0xff] }
 0xabe   :  { %vm705_vm9 = vcmp.ne.f32.partialorder %v840_v45, 0.0 }
 0xb2f   :  { %v538_v48 = vpop.permute.xlu0 %537 }
 0xb30   :  { %v540_v50 = vmul.f32 %v538_v48, %v535_v46 }
 0xb32   :  { %v546_v51 = vadd.f32 %v545_v49, %v540_v50  ;;  %v841_v49 = vld [vmem:[%s1238_s5] ss:$0 sm:$0xff] }
 0xb34   :  { %551 = vrot.lane.b32.xlu0 %v546_v51, %s938_s17 }
 0xba6   :  { %v552_v52 = vpop.permute.xlu0 %551 }
 0xba7   :  { %v554_v53 = vsel %vm549_vm6, %v552_v52, %v476_v36 }
 0xba8   :  { %620 = vrot.lane.b32.xlu0 %v554_v53, %s938_s17  ;;  %v558_v54 = vpack.c.bf16 %v554_v53, %v554_v53 }
 0xbaa   :  { %833 = vmatmul.mubr.msk.bf16.vlgmr.msra.gmra.mrb[12].mxu0 %vm95_vm1, %v558_v54 }
 0xc1a   :  { %v621_v18 = vpop.permute.xlu0 %620 }
 0xc7d   :  { %v596_v56 = vpop.f32.mrb[12].mxu0 }
 0xc7e   :  { %v597_v57 = vadd.f32 %v596_v56, %v1049_v13  ;;  %v598_v58 = vpop.f32.mrb[13].mxu0 }
 0xc7f   :  { %v600_v59 = vpop.f32.mrb[14].mxu0  ;;  %v599_v10 = vadd.f32 %v598_v58, %v1055_v25 }
 0xc80   :  { %v603_v60 = vadd.f32 %v831_v55, %v597_v57  ;;  %v601_v61 = vpop.f32.mrb[15].mxu0 }
 0xc82   :  { %v834_v62 = vmul.f32 -1.442695, %v603_v60 }
 0xc84   :  { %921 = vpow2.f32 %v834_v62 }
 0xc8e   :  { %v922_v63 = vpop.eup %921 }
 0xc8f   :  { %v607_v9 = vadd.f32 1.0, %v922_v63 }
 0xc91   :  { %923 = vrcp.f32 %v607_v9 }
 0xc9b   :  { %v924_v11 = vpop.eup %923 }
 0xc9c   :  { %v610_v14 = vmul.f32 %v924_v11, %v599_v10  ;;  %v613_v17 = vsub.f32 1.0, %v924_v11  ;;  %v623_v20 = vmul.f32 %v924_v11, %v621_v18 }
 0xc9e   :  { %v611_v15 = vadd.f32 %v832_v12, %v610_v14 }
 0xca0   :  { %925 = vtanh.f32 %v611_v15 }
 0xcaa   :  { %v926_v16 = vpop.eup %925 }
 0xcab   :  { %615 = vrot.lane.b32.xlu1 %v926_v16, %s938_s17 }
 0xd1d   :  { %v616_v19 = vpop.permute.xlu1 %615 }
 0xd1e   :  { %v618_v21 = vmul.f32 %v616_v19, %v613_v17 }
 0xd20   :  { %v624_v22 = vadd.f32 %v623_v20, %v618_v21 }
 0xd22   :  { %629 = vrot.lane.b32.xlu1 %v624_v22, %s938_s17 }
 0xd94   :  { %v630_v24 = vpop.permute.xlu1 %629 }
 0xd95   :  { %v632_v26 = vsel %vm627_vm7, %v630_v24, %v554_v53 }
 0xd96   :  { %698 = vrot.lane.b32.xlu1 %v632_v26, %s938_s17  ;;  %v636_v27 = vpack.c.bf16 %v632_v26, %v632_v26 }
 0xd98   :  { %838 = vmatmul.mubr.msk.bf16.vlgmr.msra.gmra.mrb[12].mxu1 %vm95_vm1, %v636_v27 }
 0xe08   :  { %v699_v6 = vpop.permute.xlu1 %698 }
 0xe6b   :  { %v674_v29 = vpop.f32.mrb[12].mxu1 }
 0xe6c   :  { %v675_v30 = vadd.f32 %v674_v29, %v1049_v13  ;;  %v676_v31 = vpop.f32.mrb[13].mxu1  ;;  %v939_v13 = vmov 0.0  }
 0xe6d   :  { %v678_v32 = vpop.f32.mrb[14].mxu1  ;;  %v677_v38 = vadd.f32 %v676_v31, %v1055_v25  ;;  %853 = vmatprep.subr.bf16.mxu0 %v939_v13  ;;  %v883_v25 = vld [vmem:[%s1237_s4 + $0x10] sm:$0xff]   ;;  %861 = vmatprep.mubr.msk.bf16.mxu0 %vm940_vm8, %v939_v13 }
 0xe6e   :  { %v681_v33 = vadd.f32 %v836_v28, %v675_v30  ;;  %v679_v34 = vpop.f32.mrb[15].mxu1  ;;  %854 = vmatpush3.bf16.msra.mxu0 %v881_v3 }
 0xe6f   :  { %855 = vmatprep.subr.bf16.mxu0 %v939_v13 }
 0xe70   :  { %v839_v35 = vmul.f32 -1.442695, %v681_v33 }
 0xe72   :  { %927 = vpow2.f32 %v839_v35  ;;  %856 = vmatpush3.bf16.msra.mxu0 %v882_v41 }
 0xe73   :  { %857 = vmatprep.subr.bf16.mxu0 %v939_v13 }
 0xe76   :  { %858 = vmatpush3.bf16.msra.mxu0 %v883_v25 }
 0xe77   :  { %859 = vmatprep.subr.bf16.mxu0 %v939_v13 }
 0xe7a   :  { %860 = vmatpush3.bf16.msra.mxu0 %v884_v5 }
 0xe7c   :  { %v928_v36 = vpop.eup %927 }
 0xe7d   :  { %v685_v37 = vadd.f32 1.0, %v928_v36 }
 0xe7f   :  { %929 = vrcp.f32 %v685_v37 }
 0xe89   :  { %v930_v39 = vpop.eup %929 }
 0xe8a   :  { %v688_v1 = vmul.f32 %v930_v39, %v677_v38  ;;  %v691_v42 = vsub.f32 1.0, %v930_v39  ;;  %v701_v8 = vmul.f32 %v930_v39, %v699_v6 }
 0xe8c   :  { %v689_v40 = vadd.f32 %v837_v2, %v688_v1 }
 0xe8e   :  { %931 = vtanh.f32 %v689_v40 }
 0xe98   :  { %v932_v4 = vpop.eup %931 }
 0xe99   :  { %693 = vrot.lane.b32.xlu0 %v932_v4, %s938_s17 }
 0xf0b   :  { %v694_v7 = vpop.permute.xlu0 %693 }
 0xf0c   :  { %v696_v43 = vmul.f32 %v694_v7, %v691_v42 }
 0xf0e   :  { %v702_v44 = vadd.f32 %v701_v8, %v696_v43 }
 0xf10   :  { %707 = vrot.lane.b32.xlu0 %v702_v44, %s938_s17 }
 0xf82   :  { %v708_v46 = vpop.permute.xlu0 %707 }
 0xf83   :  { %v710_v47 = vsel %vm705_vm9, %v708_v46, %v632_v26 }
 0xf84   :  { %v711_v48 = vpack.c.bf16 %v710_v47, %v710_v47 }
 0xf86   :  { %862 = vmatmul.mubr.msk.bf16.vlgmr.msra.gmra.mrb[16].mxu0 %vm95_vm1, %v711_v48 }
0x1059   :  { %v779_v50 = vpop.f32.mrb[16].mxu0 }
0x105a   :  { %v780_v51 = vadd.f32 %v841_v49, %v779_v50  ;;  %v863_v0 = vpop.f32.mrb[17].mxu0 }
0x105b   :  { %v782_v52 = vpop.f32.mrb[18].mxu0 }
0x105c   :  { %v847_v53 = vmul.f32 -1.442695, %v780_v51  ;;  %v864_v54 = vpop.f32.mrb[19].mxu0 }
0x105e   :  { %933 = vpow2.f32 %v847_v53 }
0x1068   :  { %v934_v55 = vpop.eup %933 }
0x1069   :  { %v788_v56 = vadd.f32 1.0, %v934_v55 }
0x106b   :  { %935 = vrcp.f32 %v788_v56 }
0x1075   :  { %v936_v57 = vpop.eup %935 }
0x1076   :  { %792 = vst.msk [vmem:[%s1239_s6] sm:$0xff] %vm791_vm10, %v936_v57 }

</bundles_post_ra>
